<compile_context>
chip_gen: v7x
topology: tpu7x:2x2x1
jax: 0.10.0
libtpu: 0.0.40
codegen_flags: <defaults>
</compile_context>

<pallas_src>
import numpy as np
import jax
import jax.numpy as jnp
from jax.experimental import pallas as pl
from jax.experimental.pallas import tpu as pltpu

# ---- module hyper-parameters (small, forward-consistent shapes) ----
N_FFT = 512
WIN_LENGTH = N_FFT            # win_length = n_fft
HOP = WIN_LENGTH // 4         # hop_length = win_length // 4  (= 128 = 1 lane width)
B = 2                         # batch
T = 8                         # time frames
LENGTH = 1024                 # requested output length (center=True)


# --------------------- parameter construction (host side) ----------------------
def _hann_periodic(n):
    # librosa.filters.get_window('hann', n, fftbins=True)
    k = np.arange(n)
    return 0.5 - 0.5 * np.cos(2.0 * np.pi * k / n)


def make_fused_weight(n_fft):
    """Fused (n_fft, n_fft) synthesis matrix.

    Row layout: [real bins 0..n/2 | imag bins 1..n/2-1].
    W[m, a] folds conv_real, conv_imag AND the conjugate-symmetric mirror
    (`reverse` conv + sign flip) of the PyTorch module into one matmul.
    """
    n_half = n_fft // 2
    win = _hann_periodic(n_fft)
    ang = 2.0 * np.pi * np.outer(np.arange(n_fft), np.arange(n_fft)) / n_fft
    # conv_real.weight[a, c] = cos(2*pi*a*c/n)/n * win[a]; stored transposed: [c, a]
    wr = (np.cos(ang) / n_fft) * win[None, :]
    wi = (np.sin(ang) / n_fft) * win[None, :]
    real_rows = wr[:n_half + 1].copy()                 # bins c = 0..n/2
    real_rows[1:n_half] += wr[n_fft - 1:n_half:-1]     # + mirrored bin (n - c)
    imag_rows = -wi[1:n_half]                          # bins c = 1..n/2-1 (minus sign)
    imag_rows = imag_rows + wi[n_fft - 1:n_half:-1]    # + mirrored bin (sign folded)
    w = np.concatenate([real_rows, imag_rows], axis=0)  # (n_fft, n_fft)
    return w.astype(np.float32), win


def window_sumsquare_inv(win, n_frames, hop, n_fft):
    """1 / clip(librosa.filters.window_sumsquare(...), 1e-8, inf)."""
    L = n_fft + hop * (n_frames - 1)
    wsq = win.astype(np.float64) ** 2
    x = np.zeros(L, dtype=np.float64)
    for t in range(n_frames):
        x[t * hop:t * hop + n_fft] += wsq
    return (1.0 / np.clip(x, 1e-8, np.inf)).astype(np.float32)


# ---------------------------------- kernel ------------------------------------
def _make_istft_kernel(batch, t_pad, n_fft, hop, rows_out, start_row, lead):
    n_q = n_fft // hop   # quarters per frame (= 4)

    def kernel(x_ref, w_ref, winv_ref, y_ref):
        # x_ref   : (batch*t_pad, n_fft) bf16  stacked [real | imag] bins, zero-padded frames
        # w_ref   : (n_fft, n_fft)       bf16  fused windowed-IDFT weights
        # winv_ref: (rows_out, hop)      f32   1 / window_sumsquare, pre-trimmed
        # y_ref   : (batch, rows_out, hop) f32
        s = jnp.dot(x_ref[...], w_ref[...],
                    preferred_element_type=jnp.float32)        # (batch*t_pad, n_fft)
        s3 = s.reshape(batch, t_pad, n_fft)
        # Overlap-add + center trim: output row r (hop samples) collects quarter k
        # of padded frame f = r + start_row - k + lead.  The zero frame padding
        # guarantees every term is a static, in-bounds, lane-aligned slice, so the
        # OLA is n_q wide slab adds on register values (no scratch, no scatter).
        acc = None
        for k in range(n_q):
            f0 = start_row - k + lead
            term = s3[:, f0:f0 + rows_out, k * hop:(k + 1) * hop]
            acc = term if acc is None else acc + term
        y_ref[...] = acc * winv_ref[...][None]

    return kernel


# --------------------------------- wrapper ------------------------------------
def istft_pallas(real_stft, imag_stft, length, w_fused, winv_full,
                 n_fft=N_FFT, hop=HOP):
    """real_stft / imag_stft: (B, 1, T, n_fft//2+1) -> (B, length)."""
    Bn, _, Tn, n_bins = real_stft.shape
    n_half = n_fft // 2
    assert n_bins == n_half + 1
    L = n_fft + hop * (Tn - 1)
    n_q = n_fft // hop
    start = n_fft // 2                      # center=True trim start (= 2 * hop)
    assert start % hop == 0
    start_row = start // hop
    rows_avail = (L // hop) - start_row
    rows_out = min(-(-length // hop), rows_avail)

    # Zero-pad frames so every OLA slice in the kernel is static & in-bounds and
    # M = Bn * t_pad is a multiple of 8 (a few extra all-zero MXU rows are free).
    lead = max(0, (n_q - 1) - start_row)
    t_pad = max(rows_out + start_row + lead, lead + Tn)
    t_pad = -(-t_pad // 8) * 8

    r = real_stft[:, 0, :, :]                                   # (B, T, n/2+1)
    im = imag_stft[:, 0, :, :]
    # Conjugate-symmetric mirror is folded into the weights -> only stack the
    # unique bins: [real 0..n/2 | imag 1..n/2-1]  (K = n_fft).
    x = jnp.concatenate([r, im[:, :, 1:n_half]], axis=-1)       # (B, T, n_fft)
    x = jnp.pad(x, ((0, 0), (lead, t_pad - lead - Tn), (0, 0)))
    x = x.reshape(Bn * t_pad, n_fft).astype(jnp.bfloat16)
    w_bf16 = w_fused.astype(jnp.bfloat16)

    winv2d = winv_full[start:start + rows_out * hop].reshape(rows_out, hop)

    kernel = _make_istft_kernel(Bn, t_pad, n_fft, hop, rows_out, start_row, lead)
    y3 = pl.pallas_call(
        kernel,
        out_shape=jax.ShapeDtypeStruct((Bn, rows_out, hop), jnp.float32),
        grid_spec=pltpu.PrefetchScalarGridSpec(
            num_scalar_prefetch=0,
            grid=(1,),                       # batch folded into matmul M: one step
            in_specs=[
                pl.BlockSpec((Bn * t_pad, n_fft), lambda i: (0, 0)),
                pl.BlockSpec((n_fft, n_fft), lambda i: (0, 0)),
                pl.BlockSpec((rows_out, hop), lambda i: (0, 0)),
            ],
            out_specs=pl.BlockSpec((Bn, rows_out, hop), lambda i: (0, 0, 0)),
        ),
        compiler_params=pltpu.CompilerParams(
            dimension_semantics=("arbitrary",)),
    )(x, w_bf16, winv2d)

    # Free reshape (row-major bitcast); slice/pad are no-ops at these shapes.
    y = y3.reshape(Bn, rows_out * hop)[:, :length]
    if y.shape[-1] < length:                 # torch zero-pad branch (length > avail)
        y = jnp.concatenate(
            [y, jnp.zeros((Bn, length - y.shape[-1]), y.dtype)], axis=-1)
    return y


# --------------------------- numpy float64 reference ---------------------------
def istft_reference(real_stft, imag_stft, length, n_fft=N_FFT, hop=HOP):
    """Direct transcription of the PyTorch forward (mirror, two convs, OLA, winv)."""
    real = np.asarray(real_stft, np.float64)[:, 0]
    imag = np.asarray(imag_stft, np.float64)[:, 0]
    Bn, Tn, _ = real.shape
    n_half = n_fft // 2
    win = _hann_periodic(n_fft)
    k = np.arange(n_fft)
    W = np.exp(2j * np.pi * np.outer(k, k) / n_fft) / n_fft      # idft_matrix / n
    conv_r = (np.real(W) * win[None, :]).T                       # [a, c]
    conv_i = (np.imag(W) * win[None, :]).T
    idx = np.concatenate([np.arange(n_half + 1), np.arange(n_half - 1, 0, -1)])
    sgn = np.concatenate([np.ones(n_half + 1), -np.ones(n_half - 1)])
    fr = real[:, :, idx]
    fi = imag[:, :, idx] * sgn[None, None, :]
    s = np.einsum('btc,ac->bta', fr, conv_r) - np.einsum('btc,ac->bta', fi, conv_i)
    L = n_fft + hop * (Tn - 1)
    y = np.zeros((Bn, L))
    wss = np.zeros(L)
    for t in range(Tn):
        y[:, t * hop:t * hop + n_fft] += s[:, t]
        wss[t * hop:t * hop + n_fft] += win ** 2
    y = y / np.clip(wss, 1e-8, np.inf)[None, :]
    start = n_fft // 2
    out = y[:, start:start + length]
    if out.shape[1] < length:
        out = np.concatenate([out, np.zeros((Bn, length - out.shape[1]))], axis=1)
    return out.astype(np.float32)


if __name__ == "__main__":
    key = jax.random.PRNGKey(0)
    k1, k2 = jax.random.split(key)
    n_bins = N_FFT // 2 + 1
    real_stft = jax.random.normal(k1, (B, 1, T, n_bins), dtype=jnp.float32)
    imag_stft = jax.random.normal(k2, (B, 1, T, n_bins), dtype=jnp.float32)

    w_np, win = make_fused_weight(N_FFT)
    winv_np = window_sumsquare_inv(win, T, HOP, N_FFT)

    w_fused = jnp.asarray(w_np)
    winv_full = jnp.asarray(winv_np)

    y = istft_pallas(real_stft, imag_stft, LENGTH, w_fused, winv_full)
    y = jax.block_until_ready(y)

    y_ref = istft_reference(real_stft, imag_stft, LENGTH)
    assert y.shape == (B, LENGTH)
    # bf16 matmul operands with f32 MXU accumulation vs float64 reference.
    np.testing.assert_allclose(np.asarray(y), y_ref, rtol=2e-2, atol=2e-3)

    print("KERNEL_OK")
</pallas_src>

<mosaic_0001>
module attributes {stable_mosaic.version = 11 : i64} {
  func.func @kernel(%arg0: i32, %arg1: memref<32x512xbf16, #tpu.memory_space<vmem>>, %arg2: memref<512x512xbf16, #tpu.memory_space<vmem>>, %arg3: memref<8x128xf32, #tpu.memory_space<vmem>>, %arg4: memref<2x8x128xf32, #tpu.memory_space<vmem>>) attributes {dimension_semantics = [#tpu.dimension_semantics<arbitrary>], iteration_bounds = array<i64: 1>, scalar_prefetch = 0 : i64, scratch_operands = 0 : i64, tpu.core_type = #tpu.core_type<tc>, window_params = [{pipeline_mode = #tpu.pipeline_mode<synchronous>, transform_indices = @transform_0, window_bounds = array<i64: 32, 512>}, {pipeline_mode = #tpu.pipeline_mode<synchronous>, transform_indices = @transform_1, window_bounds = array<i64: 512, 512>}, {pipeline_mode = #tpu.pipeline_mode<synchronous>, transform_indices = @transform_2, window_bounds = array<i64: 8, 128>}, {pipeline_mode = #tpu.pipeline_mode<synchronous>, transform_indices = @transform_3, window_bounds = array<i64: 2, 8, 128>}]} {
    %c0 = arith.constant 0 : index
    %c0_0 = arith.constant 0 : index
    %0 = vector.load %arg1[%c0, %c0_0] : memref<32x512xbf16, #tpu.memory_space<vmem>>, vector<32x512xbf16>
    %c0_1 = arith.constant 0 : index
    %c0_2 = arith.constant 0 : index
    %1 = vector.load %arg2[%c0_1, %c0_2] : memref<512x512xbf16, #tpu.memory_space<vmem>>, vector<512x512xbf16>
    %cst = arith.constant dense<0.000000e+00> : vector<32x512xf32>
    %2 = tpu.matmul %0, %1, %cst {dimension_numbers = #tpu.dot_dimension_numbers<[1], [0], [0], [1], [0, 0, 1, 1], [], []>} : vector<32x512xbf16>, vector<512x512xbf16>, vector<32x512xf32> -> vector<32x512xf32>
    %3 = vector.shape_cast %2 : vector<32x512xf32> to vector<2x16x512xf32>
    %4 = vector.extract_strided_slice %3 {offsets = [0, 3, 0], sizes = [2, 8, 128], strides = [1, 1, 1]} : vector<2x16x512xf32> to vector<2x8x128xf32>
    %5 = vector.extract_strided_slice %3 {offsets = [0, 2, 128], sizes = [2, 8, 128], strides = [1, 1, 1]} : vector<2x16x512xf32> to vector<2x8x128xf32>
    %6 = arith.addf %4, %5 : vector<2x8x128xf32>
    %7 = vector.extract_strided_slice %3 {offsets = [0, 1, 256], sizes = [2, 8, 128], strides = [1, 1, 1]} : vector<2x16x512xf32> to vector<2x8x128xf32>
    %8 = arith.addf %6, %7 : vector<2x8x128xf32>
    %9 = vector.extract_strided_slice %3 {offsets = [0, 0, 384], sizes = [2, 8, 128], strides = [1, 1, 1]} : vector<2x16x512xf32> to vector<2x8x128xf32>
    %10 = arith.addf %8, %9 : vector<2x8x128xf32>
    %c0_3 = arith.constant 0 : index
    %c0_4 = arith.constant 0 : index
    %11 = vector.load %arg3[%c0_3, %c0_4] : memref<8x128xf32, #tpu.memory_space<vmem>>, vector<8x128xf32>
    %12 = vector.shape_cast %11 : vector<8x128xf32> to vector<1x8x128xf32>
    %13 = vector.broadcast %12 : vector<1x8x128xf32> to vector<2x8x128xf32>
    %14 = arith.mulf %10, %13 : vector<2x8x128xf32>
    %c0_5 = arith.constant 0 : index
    %c0_6 = arith.constant 0 : index
    %c0_7 = arith.constant 0 : index
    %15 = vector.load %arg4[%c0_5, %c0_6, %c0_7] : memref<2x8x128xf32, #tpu.memory_space<vmem>>, vector<2x8x128xf32>
    tpu.vector_store %arg4[%c0_5, %c0_6, %c0_7], %14 {strides = array<i32>} : memref<2x8x128xf32, #tpu.memory_space<vmem>>, vector<2x8x128xf32>,
    return
  }
  func.func @transform_0(%arg0: i32) -> (i32, i32) {
    %c0_i32 = arith.constant 0 : i32
    %c0_i32_0 = arith.constant 0 : i32
    %c0_i32_1 = arith.constant 0 : i32
    return %c0_i32, %c0_i32_0 : i32, i32
  }
  func.func @transform_1(%arg0: i32) -> (i32, i32) {
    %c0_i32 = arith.constant 0 : i32
    %c0_i32_0 = arith.constant 0 : i32
    %c0_i32_1 = arith.constant 0 : i32
    return %c0_i32, %c0_i32_0 : i32, i32
  }
  func.func @transform_2(%arg0: i32) -> (i32, i32) {
    %c0_i32 = arith.constant 0 : i32
    %c0_i32_0 = arith.constant 0 : i32
    %c0_i32_1 = arith.constant 0 : i32
    return %c0_i32, %c0_i32_0 : i32, i32
  }
  func.func @transform_3(%arg0: i32) -> (i32, i32, i32) {
    %c0_i32 = arith.constant 0 : i32
    %c0_i32_0 = arith.constant 0 : i32
    %c0_i32_1 = arith.constant 0 : i32
    %c0_i32_2 = arith.constant 0 : i32
    return %c0_i32, %c0_i32_0, %c0_i32_1 : i32, i32, i32
  }
}

</mosaic_0001>

<bundles_post_ra>
// kernel: tpu_custom_call.1
= control target key start
LH: loop header
LB: loop body
LE: loop exit
PB: predicated region body
PF: predicated region fallthrough
CT: control target
= control target key end

     0   :  { %8 = vsyncpa [#allocation3], 0  ;;  %s1701_s0 = inlined_call_operand.hbm [shape: bf16[32,512], index: 0, kind: input, shape index: {}]   ;;  %s1702_s1 = inlined_call_operand.hbm [shape: bf16[512,512], index: 1, kind: input, shape index: {}]   ;;  %s1703_s2 = inlined_call_operand.hbm [shape: f32[8,128], index: 2, kind: input, shape index: {}]   ;;  %s1704_s3 = inlined_call_operand.hbm [shape: f32[2,8,128], index: 3, kind: output, shape index: {}]  }
   0x1   :  { %9 = vsyncpa [#allocation6], 0 }
   0x2   :  { %10 = vsyncpa [#allocation4], 0  ;;  %s1614_s12 = smov [#allocation5]   ;;  %s1615_s14 = smov [#allocation2]  }
   0x3   :  { %s28_s13 = sshll.u32 %s1614_s12, 4  ;;  %s16_s15 = sshll.u32 %s1615_s14, 4  ;;  %s29_s13 = int_to_ptr.vmem [resolvable:$true] %s28_s13  ;;  %s1642_s15 = int_to_ptr.vmem [resolvable:$true] %s16_s15 }
   0x4   :  { %s1520_s18 = scalar_lea.hbm %s1702_s1, 16384 }
   0x5   :  { %p1521_p0 = scmp.ne.s32.totalorder %s1702_s1, %s1520_s18  ;;  %p1524_p1 = scmp.lt.u32.totalorder %s1520_s18, %s1702_s1 }
   0x7   :  { %p1526_p2 = pnand %p1524_p1, %p1521_p0 }
   0x9   :  { %1529 = shalt.err (!%p1526_p2)
}
   0xa   :  { %s1530_s23 = scalar_lea.vmem %s29_s13, 16384  ;;  %p1535_p4 = scmp.lt.s32.totalorder %s29_s13, %s29_s13 }
   0xb   :  { %p1531_p3 = scmp.ne.s32.totalorder %s29_s13, %s1530_s23  ;;  %p1536_p5 = scmp.lt.s32.totalorder %s1530_s23, %s1530_s23 }
   0xd   :  { %p1537_p6 = por %p1536_p5, %p1535_p4 }
   0xf   :  { %p1538_p7 = pnand %p1537_p6, %p1531_p3 }
  0x11   :  { %1541 = shalt.err (!%p1538_p7)
}
  0x12   :  { %s1616_s24 = smov 256   ;;  %s1617_s25 = smov 16  }
  0x13   :  { %34 = dma.hbm_to_vmem [thread:$0]  %s1702_s1, 16384, %s29_s13, [#allocation6], %s1616_s24, %s1616_s24, %s1617_s25  }
  0x14   :  { %s1542_s30 = scalar_lea.hbm %s1701_s0, 1024 }
  0x15   :  { %p1543_p8 = scmp.ne.s32.totalorder %s1701_s0, %s1542_s30  ;;  %p1546_p9 = scmp.lt.u32.totalorder %s1542_s30, %s1701_s0 }
  0x17   :  { %p1548_p10 = pnand %p1546_p9, %p1543_p8 }
  0x19   :  { %1551 = shalt.err (!%p1548_p10)
}
  0x1a   :  { %s1552_s8 = scalar_lea.vmem %s1642_s15, 1024  ;;  %p1557_p12 = scmp.lt.s32.totalorder %s1642_s15, %s1642_s15 }
  0x1b   :  { %p1553_p11 = scmp.ne.s32.totalorder %s1642_s15, %s1552_s8  ;;  %p1558_p13 = scmp.lt.s32.totalorder %s1552_s8, %s1552_s8 }
  0x1d   :  { %p1559_p0 = por %p1558_p13, %p1557_p12 }
  0x1f   :  { %p1560_p1 = pnand %p1559_p0, %p1553_p11 }
  0x21   :  { %1563 = shalt.err (!%p1560_p1)
}
  0x22   :  { %22 = dma.hbm_to_vmem [thread:$0]  %s1701_s0, 1024, %s1642_s15, [#allocation3], %s1616_s24, %s1616_s24, %s1617_s25  }
  0x23   :  { %s1618_s10 = smov [#allocation7]   ;;  %s1564_s14 = scalar_lea.hbm %s1703_s2, 128 }
  0x24   :  { %s41_s11 = sshll.u32 %s1618_s10, 4  ;;  %p1565_p2 = scmp.ne.s32.totalorder %s1703_s2, %s1564_s14  ;;  %s42_s11 = int_to_ptr.vmem [resolvable:$true] %s41_s11 }
  0x25   :  { %p1568_p3 = scmp.lt.u32.totalorder %s1564_s14, %s1703_s2 }
  0x27   :  { %p1570_p4 = pnand %p1568_p3, %p1565_p2 }
  0x29   :  { %1573 = shalt.err (!%p1570_p4)
}
  0x2a   :  { %s1574_s20 = scalar_lea.vmem %s42_s11, 128  ;;  %p1579_p6 = scmp.lt.s32.totalorder %s42_s11, %s42_s11 }
  0x2b   :  { %p1575_p5 = scmp.ne.s32.totalorder %s42_s11, %s1574_s20  ;;  %p1580_p7 = scmp.lt.s32.totalorder %s1574_s20, %s1574_s20 }
  0x2d   :  { %p1581_p8 = por %p1580_p7, %p1579_p6 }
  0x2f   :  { %p1582_p9 = pnand %p1581_p8, %p1575_p5 }
  0x31   :  { %1585 = shalt.err (!%p1582_p9)
}
  0x32   :  { %44 = dma.hbm_to_vmem [thread:$0]  %s1703_s2, 128, %s42_s11, [#allocation6]  }
  0x33   :  { %1608 = dma.done.wait [#allocation3], 1024  }
  0x34   :  { %1609 = vsyncadd [#allocation3], 4294966272 }
  0x35   :  { %1610 = dma.done.wait [#allocation6], 16512  }
  0x36   :  { %1611 = vsyncadd [#allocation6], 4294950784  ;;  %v1316_v0 = vld [vmem:[#allocation5 + $0x4] ss:$16 sps:$4 sm:$0xff]   ;;  %v1318_v1 = vld [vmem:[#allocation5 + $0xc] ss:$16 sps:$4 sm:$0xff]  }
  0x37   :  { %870 = vmatprep.subr.bf16.mxu0 %v1316_v0  ;;  %v1320_v2 = vld [vmem:[#allocation5] ss:$16 sps:$4 sm:$0xff]   ;;  %v1321_v3 = vld [vmem:[#allocation5 + $0x8] ss:$16 sps:$4 sm:$0xff]   ;;  %976 = vmatprep.subr.bf16.mxu1 %v1318_v1  ;;  %v1322_v4 = vld [vmem:[#allocation5 + $0x24] ss:$16 sps:$4 sm:$0xff]  }
  0x38   :  { %871 = vmatpush1.bf16.msra.mxu0 %v1320_v2  ;;  %977 = vmatpush1.bf16.msra.mxu1 %v1321_v3  ;;  %v1324_v5 = vld [vmem:[#allocation5 + $0x2c] ss:$16 sps:$4 sm:$0xff]   ;;  %v1326_v6 = vld [vmem:[#allocation5 + $0x20] ss:$16 sps:$4 sm:$0xff]   ;;  %v1327_v7 = vld [vmem:[#allocation5 + $0x28] ss:$16 sps:$4 sm:$0xff]  }
  0x39   :  { %872 = vmatprep.subr.bf16.mxu0 %v1322_v4  ;;  %978 = vmatprep.subr.bf16.mxu1 %v1324_v5  ;;  %v1328_v8 = vld [vmem:[#allocation5 + $0x44] ss:$16 sps:$4 sm:$0xff]   ;;  %v1330_v9 = vld [vmem:[#allocation5 + $0x4c] ss:$16 sps:$4 sm:$0xff]   ;;  %v1332_v10 = vld [vmem:[#allocation5 + $0x40] ss:$16 sps:$4 sm:$0xff]  }
  0x3a   :  { %v1333_v11 = vld [vmem:[#allocation5 + $0x48] ss:$16 sps:$4 sm:$0xff]   ;;  %v1334_v12 = vld [vmem:[#allocation5 + $0x64] ss:$16 sps:$4 sm:$0xff]   ;;  %v1336_v13 = vld [vmem:[#allocation5 + $0x6c] ss:$16 sps:$4 sm:$0xff]  }
  0x3b   :  { %v1338_v14 = vld [vmem:[#allocation5 + $0x60] ss:$16 sps:$4 sm:$0xff]   ;;  %v1339_v15 = vld [vmem:[#allocation5 + $0x68] ss:$16 sps:$4 sm:$0xff]   ;;  %v1340_v16 = vld [vmem:[#allocation5 + $0x84] ss:$16 sps:$4 sm:$0xff]  }
  0x3c   :  { %873 = vmatpush1.bf16.msra.mxu0 %v1326_v6  ;;  %979 = vmatpush1.bf16.msra.mxu1 %v1327_v7  ;;  %v1342_v17 = vld [vmem:[#allocation5 + $0x8c] ss:$16 sps:$4 sm:$0xff]   ;;  %v1344_v18 = vld [vmem:[#allocation5 + $0x80] ss:$16 sps:$4 sm:$0xff]   ;;  %v1345_v19 = vld [vmem:[#allocation5 + $0x88] ss:$16 sps:$4 sm:$0xff]  }
  0x3d   :  { %874 = vmatprep.subr.bf16.mxu0 %v1328_v8  ;;  %980 = vmatprep.subr.bf16.mxu1 %v1330_v9  ;;  %v1346_v20 = vld [vmem:[#allocation5 + $0xa4] ss:$16 sps:$4 sm:$0xff]   ;;  %v1348_v21 = vld [vmem:[#allocation5 + $0xac] ss:$16 sps:$4 sm:$0xff]   ;;  %v1350_v22 = vld [vmem:[#allocation5 + $0xa0] ss:$16 sps:$4 sm:$0xff]  }
  0x3e   :  { %v1351_v23 = vld [vmem:[#allocation5 + $0xa8] ss:$16 sps:$4 sm:$0xff]   ;;  %v1352_v24 = vld [vmem:[#allocation5 + $0xc4] ss:$16 sps:$4 sm:$0xff]   ;;  %v1354_v25 = vld [vmem:[#allocation5 + $0xcc] ss:$16 sps:$4 sm:$0xff]  }
  0x3f   :  { %v1356_v26 = vld [vmem:[#allocation5 + $0xc0] ss:$16 sps:$4 sm:$0xff]   ;;  %v1357_v27 = vld [vmem:[#allocation5 + $0xc8] ss:$16 sps:$4 sm:$0xff]   ;;  %v1358_v28 = vld [vmem:[#allocation5 + $0xe4] ss:$16 sps:$4 sm:$0xff]  }
  0x40   :  { %875 = vmatpush1.bf16.msra.mxu0 %v1332_v10  ;;  %981 = vmatpush1.bf16.msra.mxu1 %v1333_v11  ;;  %v1360_v29 = vld [vmem:[#allocation5 + $0xec] ss:$16 sps:$4 sm:$0xff]   ;;  %v1362_v30 = vld [vmem:[#allocation5 + $0xe0] ss:$16 sps:$4 sm:$0xff]   ;;  %v1363_v31 = vld [vmem:[#allocation5 + $0xe8] ss:$16 sps:$4 sm:$0xff]  }
  0x41   :  { %876 = vmatprep.subr.bf16.mxu0 %v1334_v12  ;;  %982 = vmatprep.subr.bf16.mxu1 %v1336_v13  ;;  %v1364_v32 = vld [vmem:[#allocation5 + $0x104] ss:$16 sps:$4 sm:$0xff]   ;;  %v1366_v33 = vld [vmem:[#allocation5 + $0x10c] ss:$16 sps:$4 sm:$0xff]   ;;  %v1368_v34 = vld [vmem:[#allocation5 + $0x100] ss:$16 sps:$4 sm:$0xff]  }
  0x42   :  { %v1369_v35 = vld [vmem:[#allocation5 + $0x108] ss:$16 sps:$4 sm:$0xff]   ;;  %v1370_v36 = vld [vmem:[#allocation5 + $0x124] ss:$16 sps:$4 sm:$0xff]   ;;  %v1372_v37 = vld [vmem:[#allocation5 + $0x12c] ss:$16 sps:$4 sm:$0xff]  }
  0x43   :  { %v1374_v38 = vld [vmem:[#allocation5 + $0x120] ss:$16 sps:$4 sm:$0xff]   ;;  %v1375_v39 = vld [vmem:[#allocation5 + $0x128] ss:$16 sps:$4 sm:$0xff]   ;;  %v1376_v40 = vld [vmem:[#allocation5 + $0x144] ss:$16 sps:$4 sm:$0xff]  }
  0x44   :  { %877 = vmatpush1.bf16.msra.mxu0 %v1338_v14  ;;  %983 = vmatpush1.bf16.msra.mxu1 %v1339_v15  ;;  %v1378_v41 = vld [vmem:[#allocation5 + $0x14c] ss:$16 sps:$4 sm:$0xff]   ;;  %v1380_v42 = vld [vmem:[#allocation5 + $0x140] ss:$16 sps:$4 sm:$0xff]   ;;  %v1381_v43 = vld [vmem:[#allocation5 + $0x148] ss:$16 sps:$4 sm:$0xff]  }
  0x45   :  { %878 = vmatprep.subr.bf16.mxu0 %v1340_v16  ;;  %984 = vmatprep.subr.bf16.mxu1 %v1342_v17  ;;  %v1382_v44 = vld [vmem:[#allocation5 + $0x164] ss:$16 sps:$4 sm:$0xff]   ;;  %v1384_v45 = vld [vmem:[#allocation5 + $0x16c] ss:$16 sps:$4 sm:$0xff]   ;;  %v1386_v46 = vld [vmem:[#allocation5 + $0x160] ss:$16 sps:$4 sm:$0xff]  }
  0x46   :  { %v1387_v47 = vld [vmem:[#allocation5 + $0x168] ss:$16 sps:$4 sm:$0xff]   ;;  %v1414_v48 = vld [vmem:[#allocation2 + $0x4] ss:$16 sps:$4 sm:$0xff]   ;;  %v1390_v50 = vld [vmem:[#allocation5 + $0x18c] ss:$16 sps:$4 sm:$0xff]  }
  0x47   :  { %v1388_v49 = vld [vmem:[#allocation5 + $0x184] ss:$16 sps:$4 sm:$0xff]   ;;  %902 = vmatprep.mubr.bf16.mxu0 %v1414_v48  ;;  %1008 = vmatprep.mubr.bf16.mxu1 %v1414_v48  ;;  %v1392_v51 = vld [vmem:[#allocation5 + $0x180] ss:$16 sps:$4 sm:$0xff]   ;;  %v1393_v52 = vld [vmem:[#allocation5 + $0x188] ss:$16 sps:$4 sm:$0xff]  }
  0x48   :  { %879 = vmatpush1.bf16.msra.mxu0 %v1344_v18  ;;  %985 = vmatpush1.bf16.msra.mxu1 %v1345_v19  ;;  %v1394_v53 = vld [vmem:[#allocation5 + $0x1a4] ss:$16 sps:$4 sm:$0xff]   ;;  %v1396_v54 = vld [vmem:[#allocation5 + $0x1ac] ss:$16 sps:$4 sm:$0xff]   ;;  %v1398_v55 = vld [vmem:[#allocation5 + $0x1a0] ss:$16 sps:$4 sm:$0xff]  }
  0x49   :  { %880 = vmatprep.subr.bf16.mxu0 %v1346_v20  ;;  %986 = vmatprep.subr.bf16.mxu1 %v1348_v21  ;;  %v1399_v56 = vld [vmem:[#allocation5 + $0x1a8] ss:$16 sps:$4 sm:$0xff]   ;;  %v1400_v57 = vld [vmem:[#allocation5 + $0x1c4] ss:$16 sps:$4 sm:$0xff]   ;;  %v1402_v58 = vld [vmem:[#allocation5 + $0x1cc] ss:$16 sps:$4 sm:$0xff]  }
  0x4a   :  { %v1404_v59 = vld [vmem:[#allocation5 + $0x1c0] ss:$16 sps:$4 sm:$0xff]   ;;  %v1405_v60 = vld [vmem:[#allocation5 + $0x1c8] ss:$16 sps:$4 sm:$0xff]   ;;  %v1406_v61 = vld [vmem:[#allocation5 + $0x1e4] ss:$16 sps:$4 sm:$0xff]  }
  0x4b   :  { %v1408_v62 = vld [vmem:[#allocation5 + $0x1ec] ss:$16 sps:$4 sm:$0xff]   ;;  %v1410_v63 = vld [vmem:[#allocation5 + $0x1e0] ss:$16 sps:$4 sm:$0xff]   ;;  %v1411_v0 = vld [vmem:[#allocation5 + $0x1e8] ss:$16 sps:$4 sm:$0xff]  }
  0x4c   :  { %881 = vmatpush1.bf16.msra.mxu0 %v1350_v22  ;;  %987 = vmatpush1.bf16.msra.mxu1 %v1351_v23  ;;  %v1417_v1 = vld [vmem:[#allocation5 + $0x204] ss:$16 sps:$4 sm:$0xff]   ;;  %v1420_v2 = vld [vmem:[#allocation5 + $0x20c] ss:$16 sps:$4 sm:$0xff]   ;;  %v1412_v3 = vld [vmem:[#allocation2] ss:$16 sps:$4 sm:$0xff]  }
  0x4d   :  { %882 = vmatprep.subr.bf16.mxu0 %v1352_v24  ;;  %988 = vmatprep.subr.bf16.mxu1 %v1354_v25  ;;  %v1415_v4 = vld [vmem:[#allocation5 + $0x200] ss:$16 sps:$4 sm:$0xff]   ;;  %v1418_v5 = vld [vmem:[#allocation5 + $0x208] ss:$16 sps:$4 sm:$0xff]   ;;  %v1423_v6 = vld [vmem:[#allocation5 + $0x224] ss:$16 sps:$4 sm:$0xff]  }
  0x4e   :  { %v1426_v7 = vld [vmem:[#allocation5 + $0x22c] ss:$16 sps:$4 sm:$0xff]   ;;  %v1421_v8 = vld [vmem:[#allocation5 + $0x220] ss:$16 sps:$4 sm:$0xff]   ;;  %v1424_v9 = vld [vmem:[#allocation5 + $0x228] ss:$16 sps:$4 sm:$0xff]  }
  0x4f   :  { %v1429_v10 = vld [vmem:[#allocation5 + $0x244] ss:$16 sps:$4 sm:$0xff]   ;;  %v1432_v11 = vld [vmem:[#allocation5 + $0x24c] ss:$16 sps:$4 sm:$0xff]   ;;  %v1427_v12 = vld [vmem:[#allocation5 + $0x240] ss:$16 sps:$4 sm:$0xff]  }
  0x50   :  { %883 = vmatpush1.bf16.msra.mxu0 %v1356_v26  ;;  %989 = vmatpush1.bf16.msra.mxu1 %v1357_v27  ;;  %v1430_v13 = vld [vmem:[#allocation5 + $0x248] ss:$16 sps:$4 sm:$0xff]   ;;  %v1435_v14 = vld [vmem:[#allocation5 + $0x264] ss:$16 sps:$4 sm:$0xff]   ;;  %v1438_v15 = vld [vmem:[#allocation5 + $0x26c] ss:$16 sps:$4 sm:$0xff]  }
  0x51   :  { %884 = vmatprep.subr.bf16.mxu0 %v1358_v28  ;;  %990 = vmatprep.subr.bf16.mxu1 %v1360_v29  ;;  %v1433_v16 = vld [vmem:[#allocation5 + $0x260] ss:$16 sps:$4 sm:$0xff]   ;;  %v1436_v17 = vld [vmem:[#allocation5 + $0x268] ss:$16 sps:$4 sm:$0xff]   ;;  %v1441_v18 = vld [vmem:[#allocation5 + $0x284] ss:$16 sps:$4 sm:$0xff]  }
  0x52   :  { %v1444_v19 = vld [vmem:[#allocation5 + $0x28c] ss:$16 sps:$4 sm:$0xff]   ;;  %v1439_v20 = vld [vmem:[#allocation5 + $0x280] ss:$16 sps:$4 sm:$0xff]   ;;  %v1442_v21 = vld [vmem:[#allocation5 + $0x288] ss:$16 sps:$4 sm:$0xff]  }
  0x53   :  { %v1447_v22 = vld [vmem:[#allocation5 + $0x2a4] ss:$16 sps:$4 sm:$0xff]   ;;  %v1450_v23 = vld [vmem:[#allocation5 + $0x2ac] ss:$16 sps:$4 sm:$0xff]   ;;  %v1445_v24 = vld [vmem:[#allocation5 + $0x2a0] ss:$16 sps:$4 sm:$0xff]  }
  0x54   :  { %885 = vmatpush1.bf16.msra.mxu0 %v1362_v30  ;;  %991 = vmatpush1.bf16.msra.mxu1 %v1363_v31  ;;  %v1499_v25 = vld [vmem:[#allocation2 + $0x24] ss:$16 sps:$4 sm:$0xff]   ;;  %v1448_v26 = vld [vmem:[#allocation5 + $0x2a8] ss:$16 sps:$4 sm:$0xff]   ;;  %v1501_v27 = vld [vmem:[#allocation2 + $0x20] ss:$16 sps:$4 sm:$0xff]  }
  0x55   :  { %886 = vmatprep.subr.bf16.mxu0 %v1364_v32  ;;  %992 = vmatprep.subr.bf16.mxu1 %v1366_v33  ;;  %v1453_v28 = vld [vmem:[#allocation5 + $0x2c4] ss:$16 sps:$4 sm:$0xff]   ;;  %v1456_v29 = vld [vmem:[#allocation5 + $0x2cc] ss:$16 sps:$4 sm:$0xff]   ;;  %v1451_v30 = vld [vmem:[#allocation5 + $0x2c0] ss:$16 sps:$4 sm:$0xff]  }
  0x56   :  { %v1454_v31 = vld [vmem:[#allocation5 + $0x2c8] ss:$16 sps:$4 sm:$0xff]   ;;  %v1459_v32 = vld [vmem:[#allocation5 + $0x2e4] ss:$16 sps:$4 sm:$0xff]   ;;  %v1462_v33 = vld [vmem:[#allocation5 + $0x2ec] ss:$16 sps:$4 sm:$0xff]  }
  0x57   :  { %v1478_v48 = vld [vmem:[#allocation5 + $0x348] ss:$16 sps:$4 sm:$0xff]   ;;  %vm1101_vm0 = vcmask 1041408   ;;  %vm1082_vm1 = vcmask 1040384   ;;  %s1619_s2 = smov [#allocation8]  }
  0x58   :  { %887 = vmatpush1.bf16.msra.mxu0 %v1368_v34  ;;  %993 = vmatpush1.bf16.msra.mxu1 %v1369_v35  ;;  %v1516_v34 = vld [vmem:[#allocation2 + $0xc] ss:$16 sps:$4 sm:$0xff]   ;;  %v1457_v35 = vld [vmem:[#allocation5 + $0x2e0] ss:$16 sps:$4 sm:$0xff]   ;;  %s1143_s21 = sshll.u32 %s1619_s2, 4  ;;  %s1144_s21 = int_to_ptr.vmem [resolvable:$true] %s1143_s21 }
  0x59   :  { %888 = vmatprep.subr.bf16.mxu0 %v1370_v36  ;;  %994 = vmatprep.subr.bf16.mxu1 %v1372_v37  ;;  %v1460_v36 = vld [vmem:[#allocation5 + $0x2e8] ss:$16 sps:$4 sm:$0xff]   ;;  %v1465_v37 = vld [vmem:[#allocation5 + $0x304] ss:$16 sps:$4 sm:$0xff]   ;;  %s1586_s22 = scalar_lea.vmem %s1144_s21, 256  ;;  %p1591_p11 = scmp.lt.s32.totalorder %s1144_s21, %s1144_s21 }
  0x5a   :  { %p1587_p10 = scmp.ne.s32.totalorder %s1144_s21, %s1586_s22  ;;  %p1592_p12 = scmp.lt.s32.totalorder %s1586_s22, %s1586_s22 }
  0x5c   :  { %889 = vmatpush1.bf16.msra.mxu0 %v1374_v38  ;;  %995 = vmatpush1.bf16.msra.mxu1 %v1375_v39  ;;  %v1468_v38 = vld [vmem:[#allocation5 + $0x30c] ss:$16 sps:$4 sm:$0xff]   ;;  %v1463_v39 = vld [vmem:[#allocation5 + $0x300] ss:$16 sps:$4 sm:$0xff]   ;;  %p1593_p13 = por %p1592_p12, %p1591_p11 }
  0x5d   :  { %890 = vmatprep.subr.bf16.mxu0 %v1376_v40  ;;  %996 = vmatprep.subr.bf16.mxu1 %v1378_v41  ;;  %v1466_v40 = vld [vmem:[#allocation5 + $0x308] ss:$16 sps:$4 sm:$0xff]   ;;  %v1471_v41 = vld [vmem:[#allocation5 + $0x324] ss:$16 sps:$4 sm:$0xff]  }
  0x5e   :  { %p1594_p0 = pnand %p1593_p13, %p1587_p10 }
  0x60   :  { %891 = vmatpush1.bf16.msra.mxu0 %v1380_v42  ;;  %997 = vmatpush1.bf16.msra.mxu1 %v1381_v43  ;;  %v1474_v42 = vld [vmem:[#allocation5 + $0x32c] ss:$16 sps:$4 sm:$0xff]   ;;  %v1469_v43 = vld [vmem:[#allocation5 + $0x320] ss:$16 sps:$4 sm:$0xff]  }
  0x61   :  { %892 = vmatprep.subr.bf16.mxu0 %v1382_v44  ;;  %998 = vmatprep.subr.bf16.mxu1 %v1384_v45  ;;  %v1472_v44 = vld [vmem:[#allocation5 + $0x328] ss:$16 sps:$4 sm:$0xff]   ;;  %v1477_v45 = vld [vmem:[#allocation5 + $0x344] ss:$16 sps:$4 sm:$0xff]  }
  0x64   :  { %893 = vmatpush1.bf16.msra.mxu0 %v1386_v46  ;;  %999 = vmatpush1.bf16.msra.mxu1 %v1387_v47  ;;  %v1480_v46 = vld [vmem:[#allocation5 + $0x34c] ss:$16 sps:$4 sm:$0xff]   ;;  %v1475_v47 = vld [vmem:[#allocation5 + $0x340] ss:$16 sps:$4 sm:$0xff]  }
  0x65   :  { %894 = vmatprep.subr.bf16.mxu0 %v1388_v49  ;;  %1000 = vmatprep.subr.bf16.mxu1 %v1390_v50  ;;  %v1483_v49 = vld [vmem:[#allocation5 + $0x364] ss:$16 sps:$4 sm:$0xff]   ;;  %v1486_v50 = vld [vmem:[#allocation5 + $0x36c] ss:$16 sps:$4 sm:$0xff]  }
  0x68   :  { %895 = vmatpush1.bf16.msra.mxu0 %v1392_v51  ;;  %1001 = vmatpush1.bf16.msra.mxu1 %v1393_v52  ;;  %v1481_v51 = vld [vmem:[#allocation5 + $0x360] ss:$16 sps:$4 sm:$0xff]   ;;  %v1484_v52 = vld [vmem:[#allocation5 + $0x368] ss:$16 sps:$4 sm:$0xff]  }
  0x69   :  { %896 = vmatprep.subr.bf16.mxu0 %v1394_v53  ;;  %1002 = vmatprep.subr.bf16.mxu1 %v1396_v54  ;;  %v1489_v53 = vld [vmem:[#allocation5 + $0x384] ss:$16 sps:$4 sm:$0xff]   ;;  %v1492_v54 = vld [vmem:[#allocation5 + $0x38c] ss:$16 sps:$4 sm:$0xff]  }
  0x6c   :  { %897 = vmatpush1.bf16.msra.mxu0 %v1398_v55  ;;  %1003 = vmatpush1.bf16.msra.mxu1 %v1399_v56  ;;  %v1487_v55 = vld [vmem:[#allocation5 + $0x380] ss:$16 sps:$4 sm:$0xff]   ;;  %v1490_v56 = vld [vmem:[#allocation5 + $0x388] ss:$16 sps:$4 sm:$0xff]  }
  0x6d   :  { %898 = vmatprep.subr.bf16.mxu0 %v1400_v57  ;;  %1004 = vmatprep.subr.bf16.mxu1 %v1402_v58  ;;  %v1495_v57 = vld [vmem:[#allocation5 + $0x3a4] ss:$16 sps:$4 sm:$0xff]   ;;  %v1498_v58 = vld [vmem:[#allocation5 + $0x3ac] ss:$16 sps:$4 sm:$0xff]  }
  0x70   :  { %899 = vmatpush1.bf16.msra.mxu0 %v1404_v59  ;;  %1005 = vmatpush1.bf16.msra.mxu1 %v1405_v60  ;;  %v1493_v59 = vld [vmem:[#allocation5 + $0x3a0] ss:$16 sps:$4 sm:$0xff]   ;;  %v1496_v60 = vld [vmem:[#allocation5 + $0x3a8] ss:$16 sps:$4 sm:$0xff]  }
  0x71   :  { %900 = vmatprep.subr.bf16.mxu0 %v1406_v61  ;;  %1006 = vmatprep.subr.bf16.mxu1 %v1408_v62  ;;  %v1504_v61 = vld [vmem:[#allocation5 + $0x3c4] ss:$16 sps:$4 sm:$0xff]   ;;  %v1507_v62 = vld [vmem:[#allocation5 + $0x3cc] ss:$16 sps:$4 sm:$0xff]  }
  0x74   :  { %901 = vmatpush1.bf16.msra.mxu0 %v1410_v63  ;;  %1007 = vmatpush1.bf16.msra.mxu1 %v1411_v0  ;;  %v1502_v63 = vld [vmem:[#allocation5 + $0x3c0] ss:$16 sps:$4 sm:$0xff]   ;;  %v1505_v0 = vld [vmem:[#allocation5 + $0x3c8] ss:$16 sps:$4 sm:$0xff]  }
  0x75   :  { %923 = vmatprep.subr.bf16.mxu0 %v1417_v1  ;;  %1027 = vmatprep.subr.bf16.mxu1 %v1420_v2  ;;  %v1510_v1 = vld [vmem:[#allocation5 + $0x3e4] ss:$16 sps:$4 sm:$0xff]   ;;  %v1513_v2 = vld [vmem:[#allocation5 + $0x3ec] ss:$16 sps:$4 sm:$0xff]  }
  0x77   :  { %903 = vmatmul.mubr.bf16.vlgmr.msra.gmra.mrb[0].mxu0 %v1412_v3  ;;  %1009 = vmatmul.mubr.bf16.vlgmr.msra.gmra.mrb[0].mxu1 %v1412_v3  ;;  %v1508_v3 = vld [vmem:[#allocation5 + $0x3e0] ss:$16 sps:$4 sm:$0xff]  }
  0x78   :  { %924 = vmatpush1.bf16.msra.mxu0 %v1415_v4  ;;  %1028 = vmatpush1.bf16.msra.mxu1 %v1418_v5  ;;  %v1511_v4 = vld [vmem:[#allocation5 + $0x3e8] ss:$16 sps:$4 sm:$0xff]  }
  0x79   :  { %925 = vmatprep.subr.bf16.mxu0 %v1423_v6  ;;  %1029 = vmatprep.subr.bf16.mxu1 %v1426_v7  ;;  %v1514_v5 = vld [vmem:[#allocation2 + $0x8] ss:$16 sps:$4 sm:$0xff]   ;;  %v1517_v6 = vld [vmem:[#allocation2 + $0x2c] ss:$16 sps:$4 sm:$0xff]  }
  0x7a   :  { %912 = vmatprep.mubr.bf16.mxu0 %v1499_v25  ;;  %1017 = vmatprep.mubr.bf16.mxu1 %v1499_v25  ;;  %v1519_v7 = vld [vmem:[#allocation2 + $0x28] ss:$16 sps:$4 sm:$0xff]  }
  0x7c   :  { %926 = vmatpush1.bf16.msra.mxu0 %v1421_v8  ;;  %1030 = vmatpush1.bf16.msra.mxu1 %v1424_v9 }
  0x7d   :  { %927 = vmatprep.subr.bf16.mxu0 %v1429_v10  ;;  %1031 = vmatprep.subr.bf16.mxu1 %v1432_v11 }
  0x7f   :  { %913 = vmatmul.mubr.bf16.gmra.mrb[4].mxu0 %v1501_v27  ;;  %1018 = vmatmul.mubr.bf16.gmra.mrb[4].mxu1 %v1501_v27 }
  0x80   :  { %928 = vmatpush1.bf16.msra.mxu0 %v1427_v12  ;;  %1032 = vmatpush1.bf16.msra.mxu1 %v1430_v13 }
  0x81   :  { %929 = vmatprep.subr.bf16.mxu0 %v1435_v14  ;;  %1033 = vmatprep.subr.bf16.mxu1 %v1438_v15 }
  0x82   :  { %955 = vmatprep.mubr.bf16.mxu0 %v1516_v34  ;;  %1059 = vmatprep.mubr.bf16.mxu1 %v1516_v34 }
  0x84   :  { %930 = vmatpush1.bf16.msra.mxu0 %v1433_v16  ;;  %1034 = vmatpush1.bf16.msra.mxu1 %v1436_v17  ;;  %v1126_v16 = vld [vmem:[#allocation7] sm:$0xff] }
  0x85   :  { %931 = vmatprep.subr.bf16.mxu0 %v1441_v18  ;;  %1035 = vmatprep.subr.bf16.mxu1 %v1444_v19  ;;  %v1128_v25 = vrot.slane %v1126_v16, 5 }
  0x88   :  { %932 = vmatpush1.bf16.msra.mxu0 %v1439_v20  ;;  %1036 = vmatpush1.bf16.msra.mxu1 %v1442_v21 }
  0x89   :  { %933 = vmatprep.subr.bf16.mxu0 %v1447_v22  ;;  %1037 = vmatprep.subr.bf16.mxu1 %v1450_v23 }
  0x8c   :  { %934 = vmatpush1.bf16.msra.mxu0 %v1445_v24  ;;  %1038 = vmatpush1.bf16.msra.mxu1 %v1448_v26 }
  0x8d   :  { %935 = vmatprep.subr.bf16.mxu0 %v1453_v28  ;;  %1039 = vmatprep.subr.bf16.mxu1 %v1456_v29 }
  0x90   :  { %936 = vmatpush1.bf16.msra.mxu0 %v1451_v30  ;;  %1040 = vmatpush1.bf16.msra.mxu1 %v1454_v31 }
  0x91   :  { %937 = vmatprep.subr.bf16.mxu0 %v1459_v32  ;;  %1041 = vmatprep.subr.bf16.mxu1 %v1462_v33 }
  0x94   :  { %938 = vmatpush1.bf16.msra.mxu0 %v1457_v35  ;;  %1042 = vmatpush1.bf16.msra.mxu1 %v1460_v36 }
  0x95   :  { %939 = vmatprep.subr.bf16.mxu0 %v1465_v37  ;;  %1043 = vmatprep.subr.bf16.mxu1 %v1468_v38 }
  0x98   :  { %940 = vmatpush1.bf16.msra.mxu0 %v1463_v39  ;;  %1044 = vmatpush1.bf16.msra.mxu1 %v1466_v40 }
  0x99   :  { %941 = vmatprep.subr.bf16.mxu0 %v1471_v41  ;;  %1045 = vmatprep.subr.bf16.mxu1 %v1474_v42 }
  0x9c   :  { %942 = vmatpush1.bf16.msra.mxu0 %v1469_v43  ;;  %1046 = vmatpush1.bf16.msra.mxu1 %v1472_v44 }
  0x9d   :  { %943 = vmatprep.subr.bf16.mxu0 %v1477_v45  ;;  %1047 = vmatprep.subr.bf16.mxu1 %v1480_v46 }
  0xa0   :  { %944 = vmatpush1.bf16.msra.mxu0 %v1475_v47  ;;  %1048 = vmatpush1.bf16.msra.mxu1 %v1478_v48 }
  0xa1   :  { %945 = vmatprep.subr.bf16.mxu0 %v1483_v49  ;;  %1049 = vmatprep.subr.bf16.mxu1 %v1486_v50 }
  0xa4   :  { %946 = vmatpush1.bf16.msra.mxu0 %v1481_v51  ;;  %1050 = vmatpush1.bf16.msra.mxu1 %v1484_v52 }
  0xa5   :  { %947 = vmatprep.subr.bf16.mxu0 %v1489_v53  ;;  %1051 = vmatprep.subr.bf16.mxu1 %v1492_v54 }
  0xa8   :  { %948 = vmatpush1.bf16.msra.mxu0 %v1487_v55  ;;  %1052 = vmatpush1.bf16.msra.mxu1 %v1490_v56 }
  0xa9   :  { %949 = vmatprep.subr.bf16.mxu0 %v1495_v57  ;;  %1053 = vmatprep.subr.bf16.mxu1 %v1498_v58 }
  0xac   :  { %950 = vmatpush1.bf16.msra.mxu0 %v1493_v59  ;;  %1054 = vmatpush1.bf16.msra.mxu1 %v1496_v60 }
  0xad   :  { %951 = vmatprep.subr.bf16.mxu0 %v1504_v61  ;;  %1055 = vmatprep.subr.bf16.mxu1 %v1507_v62 }
  0xb0   :  { %952 = vmatpush1.bf16.msra.mxu0 %v1502_v63  ;;  %1056 = vmatpush1.bf16.msra.mxu1 %v1505_v0 }
  0xb1   :  { %953 = vmatprep.subr.bf16.mxu0 %v1510_v1  ;;  %1057 = vmatprep.subr.bf16.mxu1 %v1513_v2 }
  0xb4   :  { %954 = vmatpush1.bf16.msra.mxu0 %v1508_v3  ;;  %1058 = vmatpush1.bf16.msra.mxu1 %v1511_v4 }
  0xb7   :  { %956 = vmatmul.mubr.bf16.vlgmr.msra.gmra.mrb[0].mxu0 %v1514_v5  ;;  %1060 = vmatmul.mubr.bf16.vlgmr.msra.gmra.mrb[0].mxu1 %v1514_v5 }
  0xb8   :  { %965 = vmatprep.mubr.bf16.mxu0 %v1517_v6  ;;  %1068 = vmatprep.mubr.bf16.mxu1 %v1517_v6 }
  0xbf   :  { %966 = vmatmul.mubr.bf16.gmra.mrb[4].mxu0 %v1519_v7  ;;  %1069 = vmatmul.mubr.bf16.gmra.mrb[4].mxu1 %v1519_v7 }
 0x18a   :  { %v957_v8 = vpop.f32.mrb[0].mxu0  ;;  %v1061_v9 = vpop.f32.mrb[0].mxu1 }
 0x18b   :  { %v959_v10 = vpop.f32.mrb[1].mxu0  ;;  %v1063_v11 = vpop.f32.mrb[1].mxu1  ;;  %v1102_v15 = vrot.slane %v1061_v9, 6 }
 0x18c   :  { %v1083_v12 = vrot.slane %v959_v10, 7  ;;  %v961_v13 = vpop.f32.mrb[2].mxu0  ;;  %v1065_v14 = vpop.f32.mrb[2].mxu1  ;;  %v1118_v24 = vrot.slane %v1063_v11, 5 }
 0x18d   :  { %v1103_v17 = vrot.slane %v1065_v14, 6  ;;  %v963_v18 = vpop.f32.mrb[3].mxu0  ;;  %v1067_v19 = vpop.f32.mrb[3].mxu1 }
 0x18e   :  { %v1093_v20 = vadd.f32 %v1083_v12, %v957_v8  ;;  %v1084_v21 = vrot.slane %v963_v18, 7 }
 0x18f   :  { %v1104_v22 = vsel %vm1101_vm0, %v1102_v15, %v1103_v17 }
 0x190   :  { %v1112_v23 = vadd.f32 %v1102_v15, %v1093_v20  ;;  %v1085_v26 = vsel %vm1082_vm1, %v1083_v12, %v1084_v21 }
 0x191   :  { %v1094_v27 = vadd.f32 %v1085_v26, %v961_v13 }
 0x192   :  { %v1122_v28 = vadd.f32 %v1118_v24, %v1112_v23  ;;  %v967_v29 = vpop.f32.mrb[4].mxu0  ;;  %v1070_v30 = vpop.f32.mrb[4].mxu1 }
 0x193   :  { %v1113_v31 = vadd.f32 %v1104_v22, %v1094_v27  ;;  %v969_v32 = vpop.f32.mrb[5].mxu0  ;;  %v1072_v33 = vpop.f32.mrb[5].mxu1  ;;  %v1105_v39 = vrot.slane %v1070_v30, 6 }
 0x194   :  { %v1130_v34 = vmul.f32 %v1128_v25, %v1122_v28  ;;  %v1086_v35 = vrot.slane %v969_v32, 7  ;;  %v971_v36 = vpop.f32.mrb[6].mxu0  ;;  %v1074_v37 = vpop.f32.mrb[6].mxu1  ;;  %v1119_v48 = vrot.slane %v1072_v33, 5 }
 0x195   :  { %v1123_v38 = vadd.f32 %v1118_v24, %v1113_v31  ;;  %v1106_v40 = vrot.slane %v1074_v37, 6  ;;  %v973_v41 = vpop.f32.mrb[7].mxu0  ;;  %v1076_v42 = vpop.f32.mrb[7].mxu1 }
 0x196   :  { %1134 = vst [vmem:[#allocation8 - $0x3] sm:$0xf8] %v1130_v34  ;;  %v1095_v43 = vadd.f32 %v1086_v35, %v967_v29  ;;  %v1087_v44 = vrot.slane %v973_v41, 7 }
 0x197   :  { %v1131_v45 = vmul.f32 %v1128_v25, %v1123_v38  ;;  %v1107_v46 = vsel %vm1101_vm0, %v1105_v39, %v1106_v40 }
 0x198   :  { %v1114_v47 = vadd.f32 %v1105_v39, %v1095_v43  ;;  %v1088_v49 = vsel %vm1082_vm1, %v1086_v35, %v1087_v44 }
 0x199   :  { %1135 = vst [vmem:[#allocation8 + $0x5] sm:$0x7] %v1131_v45  ;;  %v1096_v50 = vadd.f32 %v1088_v49, %v971_v36 }
 0x19a   :  { %v1124_v51 = vadd.f32 %v1119_v48, %v1114_v47 }
 0x19b   :  { %v1115_v52 = vadd.f32 %v1107_v46, %v1096_v50 }
 0x19c   :  { %v1132_v53 = vmul.f32 %v1128_v25, %v1124_v51 }
 0x19d   :  { %v1125_v54 = vadd.f32 %v1119_v48, %v1115_v52 }
 0x19e   :  { %1136 = vst [vmem:[#allocation8 + $0x5] sm:$0xf8] %v1132_v53 }
 0x19f   :  { %v1133_v55 = vmul.f32 %v1128_v25, %v1125_v54 }
 0x1a1   :  { %1137 = vst [vmem:[#allocation8 + $0xd] sm:$0x7] %v1133_v55 }
 0x1a2   :  { %1597 = shalt.err (!%p1594_p0)
}
 0x1a3   :  { %s1598_s25 = scalar_lea.hbm %s1704_s3, 256 }
 0x1a4   :  { %p1599_p1 = scmp.ne.s32.totalorder %s1704_s3, %s1598_s25  ;;  %p1602_p2 = scmp.lt.u32.totalorder %s1598_s25, %s1704_s3 }
 0x1a6   :  { %p1604_p3 = pnand %p1602_p2, %p1599_p1 }
 0x1a8   :  { %1607 = shalt.err (!%p1604_p3)
}
 0x1a9   :  { %s1620_s30 = smov 128   ;;  %s1621_s4 = smov 8  }
 0x1aa   :  { %1149 = dma.vmem_to_hbm [thread:$0]  %s1144_s21, 256, %s1704_s3, [#allocation4], %s1620_s30, %s1620_s30, %s1621_s4  }
 0x1ab   :  { %1612 = dma.done.wait [#allocation4], 256  }
 0x1ac   :  { %1613 = vsyncadd [#allocation4], 4294967040 }
 0x1ad   :  { %1153 = vsyncpa [#allocation3], 1 }
 0x1ae   :  { %1154 = vsyncpa [#allocation6], 1 }
 0x1af   :  { %1155 = vsyncpa [#allocation4], 1 }

</bundles_post_ra>
